<compile_context>
chip_gen: v5e
topology: v5e:2x2
jax: 0.10.0
libtpu: 0.0.40
codegen_flags: <defaults>
</compile_context>

<pallas_src>
import jax
import jax.numpy as jnp
from jax.experimental import pallas as pl
from jax.experimental.pallas import tpu as pltpu


def _cdiv(a, b):
    return (a + b - 1) // b


def _round_up(a, b):
    return _cdiv(a, b) * b


def _fused_lstm_kernel(mask_ref, has_ref, xh_ref, c0_ref, bsel_ref, w_ref, hc_ref):
    """Single-step kernel: one fused matmul for all types, pre-activation select.

    mask_ref : (bm, T)        f32        exclusive "last type wins" one-hot
    has_ref  : (bm, 1)        f32        1.0 if the agent has any type, else 0.0
    xh_ref   : (bm, I+H)      bf16/f32   [x | h0] (already in MXU dtype)
    c0_ref   : (bm, H)        f32
    bsel_ref : (bm, 4H)       f32        winning-type bias (mask @ b), [i|f|o|g]
    w_ref    : (I+H, 4*T*H)   bf16/f32   fused weights, type-major, [i|f|o|g] per type
    hc_ref   : (bm, 2H)       f32        [h_n | c_n]
    """
    T = mask_ref.shape[-1]
    H = c0_ref.shape[-1]
    FH = 4 * H

    # Single MXU matmul: all gates for all types, f32 accumulation.
    gates = jnp.dot(xh_ref[...], w_ref[...],
                    preferred_element_type=jnp.float32)            # (bm, 4*T*H)

    # Pre-activation selection: reduce to one (bm, 4H) winning-gate block.
    # Accumulator starts at the (already selected) winning-type bias.
    mask = mask_ref[...]                                           # (bm, T)
    gates_win = bsel_ref[...]                                      # (bm, 4H)
    for t in range(T):                                             # T small, unrolled
        gates_win = gates_win + mask[:, t:t + 1] * gates[:, t * FH:(t + 1) * FH]

    # One wide sigmoid (i, f, o) and one tanh (g): ~5*H transcendentals per agent
    # instead of ~5*T*H.
    sig = jax.nn.sigmoid(gates_win[:, :3 * H])                     # (bm, 3H)
    g_g = jnp.tanh(gates_win[:, 3 * H:])                           # (bm, H)
    i_g = sig[:, :H]
    f_g = sig[:, H:2 * H]
    o_g = sig[:, 2 * H:]

    c_new = f_g * c0_ref[...] + i_g * g_g
    h_new = o_g * jnp.tanh(c_new)

    # Untyped agents (and padded rows) -> zeros; single lane-denser (bm, 2H) store.
    has = has_ref[...]                                             # (bm, 1)
    hc_ref[...] = has * jnp.concatenate([h_new, c_new], axis=-1)


def prepare_params(params, mxu_dtype=jnp.bfloat16):
    """One-time weight packing (hoisted out of the forward hot path).

    params: (W_ih (T,4H,I), W_hh (T,4H,H), b_ih (T,4H), b_hh (T,4H)) in PyTorch
            nn.LSTM layout with gate order [i, f, g, o] along the 4H dim.
    returns (w_packed (I+H, 4*T*H), b_packed (T, 4H), (T, I, H)).
            w_packed columns are type-major; within each type the layout is
            [i (H) | f (H) | o (H) | g (H)].  b_packed[t] uses the same layout
            with b_ih + b_hh pre-summed.
    """
    w_ih, w_hh, b_ih, b_hh = params
    T, four_h, I = w_ih.shape
    H = four_h // 4
    IH = I + H

    gate_perm = jnp.array([0, 1, 3, 2])  # PyTorch [i,f,g,o] -> [i,f,o,g]

    # Stack input/hidden weights along the contraction axis: (T, 4H, I+H).
    w_cat = jnp.concatenate([w_ih, w_hh], axis=2).astype(jnp.float32)
    w_g = jnp.take(w_cat.reshape(T, 4, H, IH), gate_perm, axis=1)    # (T, 4, H, IH)
    w_packed = jnp.transpose(w_g.reshape(T * 4 * H, IH))             # (IH, 4*T*H)
    w_packed = w_packed.astype(mxu_dtype)

    b = jnp.take((b_ih + b_hh).astype(jnp.float32).reshape(T, 4, H), gate_perm, axis=1)
    b_packed = b.reshape(T, 4 * H)                                   # (T, 4H) f32

    return w_packed, b_packed, (T, I, H)


def type_conditioned_temporal_model(inputs, hidden_state, agent_types, prepared):
    """Pallas implementation of TypeConditionedTemporalModel.forward.

    inputs:       (1, B, I) float32
    hidden_state: tuple (h0, c0), each (1, B, H) float32
    agent_types:  (B, T) (value > 0 means the agent is of that type)
    prepared:     output of prepare_params(params)
    returns:      (output (1,B,H), (h_n (1,B,H), c_n (1,B,H)))
    """
    w_packed, b_packed, (T, I, H) = prepared
    mxu_dtype = w_packed.dtype

    x = inputs[0].astype(jnp.float32)            # (B, I)
    h0 = hidden_state[0][0].astype(jnp.float32)  # (B, H)
    c0 = hidden_state[1][0].astype(jnp.float32)  # (B, H)
    B = x.shape[0]
    IH = I + H

    # Exclusive "last type wins" one-hot + has-any-type flag (pure JAX, per call).
    present = agent_types > 0                                       # (B, T)
    last_idx = jnp.max(jnp.where(present, jnp.arange(T), -1), axis=-1)   # (B,), -1 if none
    mask = jax.nn.one_hot(last_idx, T, dtype=jnp.float32)           # (B, T); zeros if -1
    has = (last_idx >= 0).astype(jnp.float32)[:, None]              # (B, 1)
    bsel = mask @ b_packed                                          # (B, 4H) winning bias

    # Fused matmul input, cast to MXU dtype in the wrapper (halves the DMA bytes).
    xh = jnp.concatenate([x, h0], axis=-1).astype(mxu_dtype)        # (B, I+H)

    # Batch tiling: >= 2 blocks whenever B > 16 (megacore split on v7x), tile
    # capped at 256 rows to bound live f32 intermediates; pad B to nb*bm.
    if B <= 16:
        bm, nb = B, 1
    else:
        nb = max(2, _cdiv(B, 256))
        bm = _round_up(_cdiv(B, nb), 8)
        nb = _cdiv(B, bm)
    Bp = bm * nb
    if Bp != B:
        pad = Bp - B
        mask = jnp.pad(mask, ((0, pad), (0, 0)))
        has = jnp.pad(has, ((0, pad), (0, 0)))    # padded rows -> zero outputs
        xh = jnp.pad(xh, ((0, pad), (0, 0)))
        c0 = jnp.pad(c0, ((0, pad), (0, 0)))
        bsel = jnp.pad(bsel, ((0, pad), (0, 0)))

    hc = pl.pallas_call(
        _fused_lstm_kernel,
        out_shape=jax.ShapeDtypeStruct((Bp, 2 * H), jnp.float32),
        grid_spec=pltpu.PrefetchScalarGridSpec(
            num_scalar_prefetch=0,
            grid=(nb,),
            in_specs=[
                pl.BlockSpec((bm, T), lambda i: (i, 0)),            # winning-type mask
                pl.BlockSpec((bm, 1), lambda i: (i, 0)),            # has-any-type flag
                pl.BlockSpec((bm, IH), lambda i: (i, 0)),           # [x | h0] (mxu dtype)
                pl.BlockSpec((bm, H), lambda i: (i, 0)),            # c0
                pl.BlockSpec((bm, 4 * H), lambda i: (i, 0)),        # winning-type bias
                pl.BlockSpec((IH, 4 * T * H), lambda i: (0, 0)),    # fused weights (resident)
            ],
            out_specs=pl.BlockSpec((bm, 2 * H), lambda i: (i, 0)),  # [h_n | c_n]
        ),
        compiler_params=pltpu.CompilerParams(
            dimension_semantics=("parallel",),
            vmem_limit_bytes=48 * 1024 * 1024,
        ),
    )(mask, has, xh, c0, bsel, w_packed)

    h_n = hc[:B, :H]
    c_n = hc[:B, H:]
    output = h_n[None]            # (1, B, H); for seq_len=1, output == h_n
    return output, (h_n[None], c_n[None])


def _reference(inputs, hidden_state, agent_types, params):
    """Pure-JAX reference replicating the PyTorch forward semantics (f32)."""
    w_ih, w_hh, b_ih, b_hh = params
    x = inputs[0]
    h0 = hidden_state[0][0]
    c0 = hidden_state[1][0]
    T = w_ih.shape[0]
    B = x.shape[0]
    H = h0.shape[-1]
    out_h = jnp.zeros((B, H), jnp.float32)
    out_c = jnp.zeros((B, H), jnp.float32)
    for t in range(T):
        gates = x @ w_ih[t].T + h0 @ w_hh[t].T + b_ih[t] + b_hh[t]
        i_g = jax.nn.sigmoid(gates[:, :H])
        f_g = jax.nn.sigmoid(gates[:, H:2 * H])
        g_g = jnp.tanh(gates[:, 2 * H:3 * H])
        o_g = jax.nn.sigmoid(gates[:, 3 * H:])
        c_new = f_g * c0 + i_g * g_g
        h_new = o_g * jnp.tanh(c_new)
        m = (agent_types[:, t] > 0)[:, None]
        out_h = jnp.where(m, h_new, out_h)
        out_c = jnp.where(m, c_new, out_c)
    return out_h[None], (out_h[None], out_c[None])


if __name__ == "__main__":
    # Small, shape-consistent example.
    B, I, H, T = 8, 16, 32, 3

    key = jax.random.PRNGKey(0)
    k = jax.random.split(key, 8)

    # Deterministic "LSTM" parameters, one set per agent type (shapes follow nn.LSTM).
    scale = 1.0 / jnp.sqrt(H)
    w_ih = jax.random.uniform(k[0], (T, 4 * H, I), jnp.float32, -scale, scale)
    w_hh = jax.random.uniform(k[1], (T, 4 * H, H), jnp.float32, -scale, scale)
    b_ih = jax.random.uniform(k[2], (T, 4 * H), jnp.float32, -scale, scale)
    b_hh = jax.random.uniform(k[3], (T, 4 * H), jnp.float32, -scale, scale)
    params = (w_ih, w_hh, b_ih, b_hh)

    inputs = jax.random.normal(k[4], (1, B, I), jnp.float32)
    h0 = jax.random.normal(k[5], (1, B, H), jnp.float32)
    c0 = jax.random.normal(k[6], (1, B, H), jnp.float32)

    # One-hot-ish type assignments; include an untyped agent (row of zeros) and a
    # multi-typed agent (last type wins), matching the PyTorch overwrite semantics.
    type_idx = jnp.array([0, 1, 2, 0, 1, 2, 0, 1])
    agent_types = jax.nn.one_hot(type_idx, T, dtype=jnp.float32)
    agent_types = agent_types.at[3].set(jnp.zeros((T,)))             # no type -> zeros
    agent_types = agent_types.at[5].set(jnp.array([1.0, 0.0, 1.0]))  # multi-type

    ref_out, (ref_h, ref_c) = _reference(inputs, (h0, c0), agent_types, params)

    # --- f32 MXU path: tight check against the pure-JAX reference. ---
    prep_f32 = prepare_params(params, mxu_dtype=jnp.float32)
    out, (h_n, c_n) = type_conditioned_temporal_model(inputs, (h0, c0), agent_types, prep_f32)
    jax.block_until_ready((out, h_n, c_n))
    assert jnp.allclose(out, ref_out, atol=1e-5), "output mismatch (f32)"
    assert jnp.allclose(h_n, ref_h, atol=1e-5), "h_n mismatch (f32)"
    assert jnp.allclose(c_n, ref_c, atol=1e-5), "c_n mismatch (f32)"

    # --- bf16-weight MXU path (perf configuration): loose check (bf16 rounding).
    # Note: x and the recurrent state h0 are truncated to bf16 before the MXU, so
    # recurrent-state precision is lower than the PyTorch f32 path.
    prep_bf16 = prepare_params(params, mxu_dtype=jnp.bfloat16)
    out16, (h16, c16) = type_conditioned_temporal_model(inputs, (h0, c0), agent_types, prep_bf16)
    jax.block_until_ready((out16, h16, c16))
    assert jnp.allclose(out16, ref_out, atol=1e-1), "output mismatch (bf16)"
    assert jnp.allclose(h16, ref_h, atol=1e-1), "h_n mismatch (bf16)"
    assert jnp.allclose(c16, ref_c, atol=1e-1), "c_n mismatch (bf16)"

    print("KERNEL_OK")
</pallas_src>

<mosaic_0001>
module attributes {stable_mosaic.version = 11 : i64} {
  func.func @_fused_lstm_kernel(%arg0: i32, %arg1: memref<8x3xf32, #tpu.memory_space<vmem>>, %arg2: memref<8x1xf32, #tpu.memory_space<vmem>>, %arg3: memref<8x48xf32, #tpu.memory_space<vmem>>, %arg4: memref<8x32xf32, #tpu.memory_space<vmem>>, %arg5: memref<8x128xf32, #tpu.memory_space<vmem>>, %arg6: memref<48x384xf32, #tpu.memory_space<vmem>>, %arg7: memref<8x64xf32, #tpu.memory_space<vmem>>) attributes {dimension_semantics = [#tpu.dimension_semantics<parallel>], iteration_bounds = array<i64: 1>, scalar_prefetch = 0 : i64, scratch_operands = 0 : i64, tpu.core_type = #tpu.core_type<tc>, window_params = [{transform_indices = @transform_0, window_bounds = array<i64: 8, 3>}, {transform_indices = @transform_1, window_bounds = array<i64: 8, 1>}, {transform_indices = @transform_2, window_bounds = array<i64: 8, 48>}, {transform_indices = @transform_3, window_bounds = array<i64: 8, 32>}, {transform_indices = @transform_4, window_bounds = array<i64: 8, 128>}, {pipeline_mode = #tpu.pipeline_mode<synchronous>, transform_indices = @transform_5, window_bounds = array<i64: 48, 384>}, {transform_indices = @transform_6, window_bounds = array<i64: 8, 64>}]} {
    %c0 = arith.constant 0 : index
    %c0_0 = arith.constant 0 : index
    %0 = vector.load %arg3[%c0, %c0_0] : memref<8x48xf32, #tpu.memory_space<vmem>>, vector<8x48xf32>
    %c0_1 = arith.constant 0 : index
    %c0_2 = arith.constant 0 : index
    %1 = vector.load %arg6[%c0_1, %c0_2] : memref<48x384xf32, #tpu.memory_space<vmem>>, vector<48x384xf32>
    %cst = arith.constant dense<0.000000e+00> : vector<8x384xf32>
    %2 = tpu.matmul %0, %1, %cst {dimension_numbers = #tpu.dot_dimension_numbers<[1], [0], [0], [1], [0, 0, 1, 1], [], []>} : vector<8x48xf32>, vector<48x384xf32>, vector<8x384xf32> -> vector<8x384xf32>
    %c0_3 = arith.constant 0 : index
    %c0_4 = arith.constant 0 : index
    %3 = vector.load %arg1[%c0_3, %c0_4] : memref<8x3xf32, #tpu.memory_space<vmem>>, vector<8x3xf32>
    %c0_5 = arith.constant 0 : index
    %c0_6 = arith.constant 0 : index
    %4 = vector.load %arg5[%c0_5, %c0_6] : memref<8x128xf32, #tpu.memory_space<vmem>>, vector<8x128xf32>
    %5 = vector.extract_strided_slice %3 {offsets = [0, 0], sizes = [8, 1], strides = [1, 1]} : vector<8x3xf32> to vector<8x1xf32>
    %6 = vector.extract_strided_slice %2 {offsets = [0, 0], sizes = [8, 128], strides = [1, 1]} : vector<8x384xf32> to vector<8x128xf32>
    %7 = vector.broadcast %5 : vector<8x1xf32> to vector<8x128xf32>
    %8 = arith.mulf %7, %6 : vector<8x128xf32>
    %9 = arith.addf %4, %8 : vector<8x128xf32>
    %10 = vector.extract_strided_slice %3 {offsets = [0, 1], sizes = [8, 1], strides = [1, 1]} : vector<8x3xf32> to vector<8x1xf32>
    %11 = vector.extract_strided_slice %2 {offsets = [0, 128], sizes = [8, 128], strides = [1, 1]} : vector<8x384xf32> to vector<8x128xf32>
    %12 = vector.broadcast %10 : vector<8x1xf32> to vector<8x128xf32>
    %13 = arith.mulf %12, %11 : vector<8x128xf32>
    %14 = arith.addf %9, %13 : vector<8x128xf32>
    %15 = vector.extract_strided_slice %3 {offsets = [0, 2], sizes = [8, 1], strides = [1, 1]} : vector<8x3xf32> to vector<8x1xf32>
    %16 = vector.extract_strided_slice %2 {offsets = [0, 256], sizes = [8, 128], strides = [1, 1]} : vector<8x384xf32> to vector<8x128xf32>
    %17 = vector.broadcast %15 : vector<8x1xf32> to vector<8x128xf32>
    %18 = arith.mulf %17, %16 : vector<8x128xf32>
    %19 = arith.addf %14, %18 : vector<8x128xf32>
    %20 = vector.extract_strided_slice %19 {offsets = [0, 0], sizes = [8, 96], strides = [1, 1]} : vector<8x128xf32> to vector<8x96xf32>
    %21 = arith.negf %20 : vector<8x96xf32>
    %22 = math.exp %21 : vector<8x96xf32>
    %cst_7 = arith.constant 1.000000e+00 : f32
    %23 = vector.broadcast %cst_7 : f32 to vector<8x96xf32>
    %24 = arith.addf %23, %22 : vector<8x96xf32>
    %25 = arith.divf %23, %24 : vector<8x96xf32>
    %26 = vector.extract_strided_slice %19 {offsets = [0, 96], sizes = [8, 32], strides = [1, 1]} : vector<8x128xf32> to vector<8x32xf32>
    %27 = math.tanh %26 : vector<8x32xf32>
    %28 = vector.extract_strided_slice %25 {offsets = [0, 0], sizes = [8, 32], strides = [1, 1]} : vector<8x96xf32> to vector<8x32xf32>
    %29 = vector.extract_strided_slice %25 {offsets = [0, 32], sizes = [8, 32], strides = [1, 1]} : vector<8x96xf32> to vector<8x32xf32>
    %30 = vector.extract_strided_slice %25 {offsets = [0, 64], sizes = [8, 32], strides = [1, 1]} : vector<8x96xf32> to vector<8x32xf32>
    %c0_8 = arith.constant 0 : index
    %c0_9 = arith.constant 0 : index
    %31 = vector.load %arg4[%c0_8, %c0_9] : memref<8x32xf32, #tpu.memory_space<vmem>>, vector<8x32xf32>
    %32 = arith.mulf %29, %31 : vector<8x32xf32>
    %33 = arith.mulf %28, %27 : vector<8x32xf32>
    %34 = arith.addf %32, %33 : vector<8x32xf32>
    %35 = math.tanh %34 : vector<8x32xf32>
    %36 = arith.mulf %30, %35 : vector<8x32xf32>
    %c0_10 = arith.constant 0 : index
    %c0_11 = arith.constant 0 : index
    %37 = vector.load %arg2[%c0_10, %c0_11] : memref<8x1xf32, #tpu.memory_space<vmem>>, vector<8x1xf32>
    %38 = tpu.concatenate %36, %34 in 1 : vector<8x32xf32>, vector<8x32xf32> -> vector<8x64xf32>
    %39 = vector.broadcast %37 : vector<8x1xf32> to vector<8x64xf32>
    %40 = arith.mulf %39, %38 : vector<8x64xf32>
    %c0_12 = arith.constant 0 : index
    %c0_13 = arith.constant 0 : index
    %41 = vector.load %arg7[%c0_12, %c0_13] : memref<8x64xf32, #tpu.memory_space<vmem>>, vector<8x64xf32>
    tpu.vector_store %arg7[%c0_12, %c0_13], %40 {strides = array<i32>} : memref<8x64xf32, #tpu.memory_space<vmem>>, vector<8x64xf32>,
    return
  }
  func.func @transform_0(%arg0: i32) -> (i32, i32) {
    %c0_i32 = arith.constant 0 : i32
    %c0_i32_0 = arith.constant 0 : i32
    return %arg0, %c0_i32 : i32, i32
  }
  func.func @transform_1(%arg0: i32) -> (i32, i32) {
    %c0_i32 = arith.constant 0 : i32
    %c0_i32_0 = arith.constant 0 : i32
    return %arg0, %c0_i32 : i32, i32
  }
  func.func @transform_2(%arg0: i32) -> (i32, i32) {
    %c0_i32 = arith.constant 0 : i32
    %c0_i32_0 = arith.constant 0 : i32
    return %arg0, %c0_i32 : i32, i32
  }
  func.func @transform_3(%arg0: i32) -> (i32, i32) {
    %c0_i32 = arith.constant 0 : i32
    %c0_i32_0 = arith.constant 0 : i32
    return %arg0, %c0_i32 : i32, i32
  }
  func.func @transform_4(%arg0: i32) -> (i32, i32) {
    %c0_i32 = arith.constant 0 : i32
    %c0_i32_0 = arith.constant 0 : i32
    return %arg0, %c0_i32 : i32, i32
  }
  func.func @transform_5(%arg0: i32) -> (i32, i32) {
    %c0_i32 = arith.constant 0 : i32
    %c0_i32_0 = arith.constant 0 : i32
    %c0_i32_1 = arith.constant 0 : i32
    return %c0_i32, %c0_i32_0 : i32, i32
  }
  func.func @transform_6(%arg0: i32) -> (i32, i32) {
    %c0_i32 = arith.constant 0 : i32
    %c0_i32_0 = arith.constant 0 : i32
    return %arg0, %c0_i32 : i32, i32
  }
}

</mosaic_0001>

<bundles_post_ra>
// kernel: tpu_custom_call.1
= control target key start
LH: loop header
LB: loop body
LE: loop exit
PB: predicated region body
PF: predicated region fallthrough
CT: control target
= control target key end

     0   :  { %11 = vsyncpa [#allocation3], 0  ;;  %s407_s0 = inlined_call_operand.vmem [shape: f32[8,3], index: 0, kind: input, shape index: {}]   ;;  %s408_s1 = inlined_call_operand.vmem [shape: f32[8,1], index: 1, kind: input, shape index: {}]   ;;  %s409_s2 = inlined_call_operand.vmem [shape: f32[8,48], index: 2, kind: input, shape index: {}]   ;;  %s410_s3 = inlined_call_operand.vmem [shape: f32[8,32], index: 3, kind: input, shape index: {}]   ;;  %s411_s4 = inlined_call_operand.hbm [shape: f32[8,128], index: 4, kind: input, shape index: {}]   ;;  %s412_s5 = inlined_call_operand.hbm [shape: f32[48,384], index: 5, kind: input, shape index: {}]   ;;  %s413_s6 = inlined_call_operand.hbm [shape: f32[8,64], index: 6, kind: output, shape index: {}]  }
   0x1   :  { %12 = vsyncpa [#allocation6], 0 }
   0x2   :  { %13 = vsyncpa [#allocation4], 0  ;;  %s27_s23 = sshll.u32 %s411_s4, 4  ;;  %s337_s24 = smov [#allocation2]   ;;  %s28_s23 = int_to_ptr.hbm [resolvable:$true] %s27_s23 }
   0x3   :  { %s29_s25 = sshll.u32 %s337_s24, 4  ;;  %s37_s28 = sshll.u32 %s412_s5, 4  ;;  %s30_s25 = int_to_ptr.vmem [resolvable:$true] %s29_s25  ;;  %s38_s28 = int_to_ptr.hbm [resolvable:$true] %s37_s28 }
   0x4   :  { %32 = dma.hbm_to_vmem [thread:$0]  %s28_s23, 128, %s30_s25, [#allocation3]  }
   0x5   :  { %s338_s29 = smov [#allocation5]   ;;  %s339_s7 = smov 384  }
   0x6   :  { %s39_s30 = sshll.u32 %s338_s29, 4  ;;  %s340_s8 = smov 24   ;;  %s40_s30 = int_to_ptr.vmem [resolvable:$true] %s39_s30 }
   0x7   :  { %45 = dma.hbm_to_vmem [thread:$0]  %s38_s28, 2304, %s40_s30, [#allocation6], %s339_s7, %s339_s7, %s340_s8  }
   0x8   :  { %331 = dma.done.wait [#allocation3], 128  }
   0x9   :  { %332 = vsyncadd [#allocation3], 4294967168 }
   0xa   :  { %333 = dma.done.wait [#allocation6], 2304  }
   0xb   :  { %334 = vsyncadd [#allocation6], 4294964992  ;;  %v341_v0 = vmov 0   ;;  %v342_v1 = vmov 2   ;;  %v70_v2 = vld [vmem:[#allocation5 + $0x78] sm:$0xff]  ;;  %v72_v3 = vld [vmem:[#allocation5 + $0x88] sm:$0xff] }
   0xc   :  { %247 = vset.pattern.permute.xlu0 %v341_v0  ;;  %249 = vset.pattern.permute.xlu1 %v342_v1  ;;  %v67_v4 = vld [vmem:[#allocation5 + $0x60] sm:$0xff]  ;;  %v69_v6 = vld [vmem:[#allocation5 + $0x70] sm:$0xff]  ;;  %v64_v7 = vld [vmem:[#allocation5 + $0x48] sm:$0xff]  ;;  %vm73_vm0 = vcmask 392192   ;;  %v344_v23 = vmov 1   ;;  %s345_s13 = smov 64  }
   0xd   :  { %87 = vmatpush.msra.mxu0 %v70_v2  ;;  %127 = vmatpush.msra.mxu2 %v72_v3  ;;  %v71_v5 = vld [vmem:[#allocation5 + $0x80] sm:$0xff]  ;;  %v68_v8 = vld [vmem:[#allocation5 + $0x68] sm:$0xff]  ;;  %v66_v9 = vld [vmem:[#allocation5 + $0x58] sm:$0xff]  ;;  %vm205_vm5 = vcmask 261120   ;;  %s346_s14 = smov [#allocation7]   ;;  %vm213_vm6 = vcmask 523264  }
   0xe   :  { %107 = vmatpush.msra.mxu1 %v71_v5  ;;  %v65_v10 = vld [vmem:[#allocation5 + $0x50] sm:$0xff]  ;;  %v63_v12 = vld [vmem:[#allocation5 + $0x40] sm:$0xff]  ;;  %v62_v13 = vld [vmem:[#allocation5 + $0x38] sm:$0xff]  ;;  %s220_s15 = sshll.u32 %s346_s14, 4  ;;  %s221_s15 = int_to_ptr.vmem [resolvable:$true] %s220_s15 }
   0xf   :  { %88 = vmatpush.msra.mxu0 %v67_v4  ;;  %128 = vmatpush.msra.mxu2 %v69_v6  ;;  %v61_v11 = vld [vmem:[#allocation5 + $0x30] sm:$0xff]  ;;  %v58_v14 = vld [vmem:[#allocation5 + $0x18] sm:$0xff]  ;;  %v60_v15 = vld [vmem:[#allocation5 + $0x28] sm:$0xff] }
  0x10   :  { %108 = vmatpush.msra.mxu1 %v68_v8  ;;  %v137_v16 = vld [vmem:[%s407_s0] sm:$0xff]  ;;  %v59_v17 = vld [vmem:[#allocation5 + $0x20] sm:$0xff]  ;;  %v57_v19 = vld [vmem:[#allocation5 + $0x10] sm:$0xff]  ;;  %s343_s0 = smov 32  }
  0x11   :  { %89 = vmatpush.msra.mxu0 %v64_v7  ;;  %129 = vmatpush.msra.mxu2 %v66_v9  ;;  %v55_v18 = vld [vmem:[#allocation5] sm:$0xff]  ;;  %v54_v20 = vld [vmem:[%s409_s2] sm:$0xff]  ;;  %v56_v21 = vld [vmem:[#allocation5 + $0x8] sm:$0xff] }
  0x12   :  { %109 = vmatpush.msra.mxu1 %v65_v10  ;;  %141 = vperm.xlu0 %247, %v137_v16   ;;  %v178_v22 = vld [vmem:[%s410_s3] sm:$0xff] }
  0x13   :  { %90 = vmatpush.msra.mxu0 %v61_v11  ;;  %130 = vmatpush.msra.mxu2 %v63_v12  ;;  %v138_v26 = vld [vmem:[#allocation2] sm:$0xff] }
  0x14   :  { %110 = vmatpush.msra.mxu1 %v62_v13  ;;  %153 = vperm.xlu1 %249, %v137_v16   ;;  %v200_v53 = vld [vmem:[%s408_s1] sm:$0xff]  ;;  %s222_s1 = sshll.u32 %s413_s6, 4  ;;  %s223_s1 = int_to_ptr.hbm [resolvable:$true] %s222_s1 }
  0x15   :  { %91 = vmatpush.msra.mxu0 %v58_v14  ;;  %131 = vmatpush.msra.mxu2 %v60_v15 }
  0x16   :  { %111 = vmatpush.msra.mxu1 %v59_v17  ;;  %180 = vrot.lane.b32.xlu2 %v178_v22, %s343_s0 }
  0x17   :  { %92 = vmatpush.msra.mxu0 %v55_v18  ;;  %132 = vmatpush.msra.mxu2 %v57_v19 }
  0x18   :  { %233 = vmatmul.msk.f32.vlgmr.msra.gmra.mxu0 %vm73_vm0, %v54_v20  ;;  %235 = vmatmul.msk.f32.vlgmr.msra.gmra.mxu2 %vm73_vm0, %v54_v20 }
  0x19   :  { %112 = vmatpush.msra.mxu1 %v56_v21 }
  0x1a   :  { %234 = vmatmul.msk.f32.vlgmr.msra.gmra.mxu1 %vm73_vm0, %v54_v20  ;;  %248 = vset.pattern.permute.xlu0 %v344_v23 }
  0x1b   :  { %147 = vperm.xlu0 %248, %v137_v16  }
  0x23   :  { %250 = vset.pattern.permute.xlu0 %v341_v0 }
  0x24   :  { %209 = vperm.xlu0 %250, %v200_v53  }
  0x70   :  { %v181_v54 = vpop.permute.xlu2 %180 }
  0x84   :  { %v142_v24 = vpop.permute.xlu0 %141 }
  0x86   :  { %v154_v32 = vpop.permute.xlu1 %153 }
  0x8d   :  { %v148_v27 = vpop.permute.xlu0 %147 }
  0x95   :  { %v94_v25 = vpop.f32.mrf.mxu0 }
  0x96   :  { %v144_v28 = vmul.f32 %v142_v24, %v94_v25  ;;  %v210_v61 = vpop.permute.xlu0 %209 }
  0x97   :  { %v114_v29 = vpop.f32.mrf.mxu1 }
  0x98   :  { %v145_v30 = vadd.f32 %v144_v28, %v138_v26  ;;  %v150_v31 = vmul.f32 %v148_v27, %v114_v29 }
  0x9a   :  { %v151_v34 = vadd.f32 %v150_v31, %v145_v30 }
  0x9b   :  { %v134_v33 = vpop.f32.mrf.mxu2 }
  0x9c   :  { %v156_v35 = vmul.f32 %v154_v32, %v134_v33 }
  0x9e   :  { %v157_v36 = vadd.f32 %v156_v35, %v151_v34 }
  0xa0   :  { %251 = vtanh.f32 %v157_v36  ;;  %v236_v38 = vmul.f32 -1.442695, %v157_v36 }
  0xa2   :  { %253 = vpow2.f32 %v236_v38 }
  0xa6   :  { %v252_v37 = vpop.eup %251 }
  0xa7   :  { %185 = vrot.lane.b32.xlu1 %v252_v37, %s343_s0 }
  0xa8   :  { %v254_v39 = vpop.eup %253 }
  0xa9   :  { %v161_v40 = vadd.f32 1.0, %v254_v39 }
  0xab   :  { %255 = vrcp.f32 %v161_v40  ;;  %v173_v46 = vand.u32 2147483648, %v161_v40  ;;  %vm167_vm2 = vweird.f32 %v161_v40  ;;  %v171_v47 = vand.u32 2147483647, %v161_v40 }
  0xad   :  { %v174_v49 = vor.u32 1.1754944e-38, %v173_v46  ;;  %vm172_vm4 = vcmp.eq.f32.partialorder %v171_v47, 8.507059e+37 }
  0xb1   :  { %v256_v41 = vpop.eup %255 }
  0xb2   :  { %v163_v42 = vmul.f32 %v256_v41, %v161_v40  ;;  %vm168_vm1 = vweird.f32 %v256_v41 }
  0xb3   :  { %vm169_vm3 = vmor %vm167_vm2, %vm168_vm1 }
  0xb4   :  { %v164_v43 = vsub.f32 1.0, %v163_v42 }
  0xb6   :  { %v165_v44 = vmul.f32 %v256_v41, %v164_v43 }
  0xb8   :  { %v166_v45 = vadd.f32 %v256_v41, %v165_v44 }
  0xba   :  { %v170_v48 = vsel %vm169_vm3, %v256_v41, %v166_v45 }
  0xbb   :  { %v175_v50 = vsel %vm172_vm4, %v174_v49, %v170_v48 }
  0xbc   :  { %v183_v55 = vmul.f32 %v181_v54, %v175_v50 }
 0x119   :  { %v186_v51 = vpop.permute.xlu1 %185 }
 0x11a   :  { %v188_v52 = vmul.f32 %v186_v51, %v175_v50 }
 0x11c   :  { %190 = vrot.lane.b32.xlu2 %v188_v52, %s343_s0 }
 0x176   :  { %v191_v56 = vpop.permute.xlu2 %190 }
 0x177   :  { %v193_v57 = vadd.f32 %v191_v56, %v183_v55 }
 0x179   :  { %257 = vtanh.f32 %v193_v57 }
 0x17f   :  { %v258_v58 = vpop.eup %257 }
 0x180   :  { %196 = vrot.lane.b32.xlu1 %v258_v58, %s343_s0 }
 0x1f2   :  { %v197_v59 = vpop.permute.xlu1 %196 }
 0x1f3   :  { %v199_v60 = vmul.f32 %v197_v59, %v175_v50 }
 0x1f5   :  { %202 = vrot.lane.b32.xlu2 %v199_v60, %s345_s13 }
 0x24f   :  { %v203_v62 = vpop.permute.xlu2 %202 }
 0x250   :  { %v206_v63 = vsel %vm205_vm5, %v203_v62, %v193_v57 }
 0x251   :  { %v212_v0 = vmul.f32 %v210_v61, %v206_v63 }
 0x253   :  { %214 = vst.msk [vmem:[#allocation7] sm:$0xff] %vm213_vm6, %v212_v0 }
 0x254   :  { %225 = dma.vmem_to_hbm [thread:$0]  %s221_s15, 128, %s223_s1, [#allocation4]  }
 0x255   :  { %335 = dma.done.wait [#allocation4], 128  }
 0x256   :  { %336 = vsyncadd [#allocation4], 4294967168 }
 0x257   :  { %230 = vsyncpa [#allocation3], 1 }
 0x258   :  { %231 = vsyncpa [#allocation6], 1 }
 0x259   :  { %232 = vsyncpa [#allocation4], 1 }

</bundles_post_ra>
